<compile_context>
chip_gen: v7x
topology: tpu7x:2x2x1
jax: 0.10.0
libtpu: 0.0.40
codegen_flags: <defaults>
</compile_context>

<pallas_src>
import functools

import jax
import jax.numpy as jnp
from jax import lax
from jax.experimental import pallas as pl
from jax.experimental.pallas import tpu as pltpu


LANE = 128  # TPU lane width; each gate block is padded to one full 128-lane span


def _ceil_to(x, m):
    return (x + m - 1) // m * m


def _lstm_kernel(x_ref, pack_ref, out_ref, gx_ref, *,
                 H, I, O, T, off_wih, off_b, off_wlin, off_blin):
    Hp = LANE
    G = 4 * Hp  # padded gate-row width

    # ---- static slices out of the single packed parameter array --------------
    w_hh = pack_ref[0:H, :]                            # (H, 4*Hp), g-block pre-scaled x2
    w_ih = pack_ref[off_wih:off_wih + I, :]            # (I, 4*Hp), g-block pre-scaled x2
    b = pack_ref[off_b:off_b + 1, :]                   # (1, 4*Hp), g-block pre-scaled x2
    w_lin = pack_ref[off_wlin:off_wlin + O, 0:Hp]      # (O, Hp),  valid lanes 0:H, rest 0
    b_lin = pack_ref[off_blin:off_blin + 1, 0:O]       # (1, O)

    # ---- hoisted input projection for all T steps (off the serial chain) -----
    if I == 1:
        # (T,1) * (1,4Hp) -> (T,4Hp): pure VPU outer product, no MXU push/drain.
        gx = x_ref[...] * w_ih + b
    else:
        gx = jnp.dot(x_ref[...], w_ih, preferred_element_type=jnp.float32) + b
    gx_ref[...] = gx                                   # stage once; per-step static vld

    # ---- recurrence: h, c live in vregs; statically unrolled over T ----------
    h = jnp.zeros((1, Hp), jnp.float32)                # valid lanes 0:H, padding stays 0
    c = jnp.zeros((1, Hp), jnp.float32)
    for t in range(T):                                 # T is static -> full unroll
        gates = gx_ref[pl.ds(t, 1), :] + jnp.dot(
            h[:, 0:H], w_hh, preferred_element_type=jnp.float32)    # (1, 4*Hp)

        sig = jax.nn.sigmoid(gates)                    # ONE EUP pass over the gate row
        i_g = sig[:, 0:Hp]                             # whole-vreg, lane-aligned slices:
        f_g = sig[:, Hp:2 * Hp]                        # no XLU rotates in the recurrence
        g_g = 2.0 * sig[:, 2 * Hp:3 * Hp] - 1.0        # tanh(z) = 2*sigmoid(2z) - 1
        o_g = sig[:, 3 * Hp:4 * Hp]

        c = f_g * c + i_g * g_g
        h = o_g * jnp.tanh(c)

    # ---- final linear layer on the last hidden state --------------------------
    if O == 1:
        # output_size == 1: VPU multiply + lane reduce (skip the MXU entirely).
        out_ref[...] = jnp.sum(h * w_lin, axis=-1, keepdims=True) + b_lin
    else:
        out_ref[...] = (lax.dot_general(
            h, w_lin, (((1,), (1,)), ((), ())),
            preferred_element_type=jnp.float32) + b_lin)


def lstm_forward(input_seq, params, hidden_size):
    """Mirrors LSTM.forward: returns predictions[-1], shape (output_size,)."""
    # TODO(synk): the module mutates self.hidden_cell across calls; here each call
    # starts from zero (h0, c0) like a freshly constructed module.
    w_ih, w_hh, b_ih, b_hh, w_lin, b_lin = params
    T = int(input_seq.shape[0])
    I = int(w_ih.shape[1])
    H = int(hidden_size)
    O = int(w_lin.shape[0])
    Hp = LANE
    G = 4 * Hp
    f32 = jnp.float32

    x = input_seq.reshape(T, I).astype(f32)

    # g-block pre-scaled by 2 so the kernel can use tanh(z) = 2*sigmoid(2z) - 1.
    gate_scale = jnp.array([1.0, 1.0, 2.0, 1.0], f32)

    def pad_gates(w_t):
        # w_t: (rows, 4H) -> (rows, 4*Hp); gate k -> lanes [k*Hp, k*Hp+H), rest zero.
        rows = w_t.shape[0]
        w4 = w_t.reshape(rows, 4, H) * gate_scale[None, :, None]
        out = jnp.zeros((rows, 4, Hp), f32).at[:, :, :H].set(w4)
        return out.reshape(rows, G)

    w_ih_p = pad_gates(w_ih.T.astype(f32))                             # (I, 4*Hp)
    w_hh_p = pad_gates(w_hh.T.astype(f32))                             # (H, 4*Hp)
    b_p = pad_gates((b_ih + b_hh).reshape(1, 4 * H).astype(f32))       # (1, 4*Hp)

    # ---- pack all parameters into ONE contiguous f32 array (single DMA) ------
    off_wih = _ceil_to(H, 8)
    off_b = off_wih + _ceil_to(I, 8)
    off_wlin = off_b + 8
    off_blin = off_wlin + _ceil_to(O, 8)
    n_rows = _ceil_to(off_blin + 1, 8)

    pack = jnp.zeros((n_rows, G), f32)
    pack = pack.at[0:H, :].set(w_hh_p)
    pack = pack.at[off_wih:off_wih + I, :].set(w_ih_p)
    pack = pack.at[off_b:off_b + 1, :].set(b_p)
    pack = pack.at[off_wlin:off_wlin + O, :H].set(w_lin.astype(f32))
    pack = pack.at[off_blin, :O].set(b_lin.astype(f32))

    kernel = functools.partial(
        _lstm_kernel, H=H, I=I, O=O, T=T,
        off_wih=off_wih, off_b=off_b, off_wlin=off_wlin, off_blin=off_blin)

    out = pl.pallas_call(
        kernel,
        out_shape=jax.ShapeDtypeStruct((1, O), f32),
        in_specs=[pl.BlockSpec(memory_space=pltpu.MemorySpace.VMEM)] * 2,
        out_specs=pl.BlockSpec(memory_space=pltpu.MemorySpace.VMEM),
        scratch_shapes=[pltpu.VMEM((T, G), f32)],      # staged input projection
    )(x, pack)
    return out[0]                                       # predictions[-1]


def lstm_reference(input_seq, params, hidden_size):
    """Pure-JAX reference matching nn.LSTM + nn.Linear semantics."""
    w_ih, w_hh, b_ih, b_hh, w_lin, b_lin = params
    T = input_seq.shape[0]
    input_size = w_ih.shape[1]
    x = input_seq.reshape(T, input_size).astype(jnp.float32)
    H = hidden_size
    h = jnp.zeros((1, H), jnp.float32)
    c = jnp.zeros((1, H), jnp.float32)
    for t in range(T):
        gates = x[t:t + 1] @ w_ih.T + h @ w_hh.T + b_ih + b_hh
        i = jax.nn.sigmoid(gates[:, 0:H])
        f = jax.nn.sigmoid(gates[:, H:2 * H])
        g = jnp.tanh(gates[:, 2 * H:3 * H])
        o = jax.nn.sigmoid(gates[:, 3 * H:4 * H])
        c = f * c + i * g
        h = o * jnp.tanh(c)
    return (h @ w_lin.T + b_lin)[0]


if __name__ == "__main__":
    # Small shapes consistent with the module: input_size=1, output_size=1.
    SEQ = 8
    INPUT_SIZE = 1
    HIDDEN = 32          # 4H = 128 (unpadded); padded gate row is 4*128 = 512 lanes
    OUTPUT_SIZE = 1

    key = jax.random.PRNGKey(0)
    k = 1.0 / jnp.sqrt(HIDDEN)
    ks = jax.random.split(key, 7)

    # Deterministic parameter init (PyTorch-style uniform(-1/sqrt(H), 1/sqrt(H))).
    w_ih = jax.random.uniform(ks[0], (4 * HIDDEN, INPUT_SIZE), jnp.float32, -k, k)
    w_hh = jax.random.uniform(ks[1], (4 * HIDDEN, HIDDEN), jnp.float32, -k, k)
    b_ih = jax.random.uniform(ks[2], (4 * HIDDEN,), jnp.float32, -k, k)
    b_hh = jax.random.uniform(ks[3], (4 * HIDDEN,), jnp.float32, -k, k)
    w_lin = jax.random.uniform(ks[4], (OUTPUT_SIZE, HIDDEN), jnp.float32, -k, k)
    b_lin = jax.random.uniform(ks[5], (OUTPUT_SIZE,), jnp.float32, -k, k)
    params = (w_ih, w_hh, b_ih, b_hh, w_lin, b_lin)

    input_seq = jax.random.normal(ks[6], (SEQ,), jnp.float32)

    out = lstm_forward(input_seq, params, HIDDEN)
    out = jax.block_until_ready(out)

    ref = lstm_reference(input_seq, params, HIDDEN)
    assert out.shape == (OUTPUT_SIZE,)
    assert jnp.allclose(out, ref, atol=1e-5, rtol=1e-5)

    print("KERNEL_OK")
</pallas_src>

<mosaic_0001>
module attributes {stable_mosaic.version = 11 : i64} {
  func.func @_lstm_kernel(%arg0: memref<8x1xf32, #tpu.memory_space<vmem>>, %arg1: memref<64x512xf32, #tpu.memory_space<vmem>>, %arg2: memref<1x1xf32, #tpu.memory_space<vmem>>, %arg3: memref<8x512xf32, #tpu.memory_space<vmem>>) attributes {dimension_semantics = [], scalar_prefetch = 0 : i64, scratch_operands = 1 : i64, tpu.core_type = #tpu.core_type<tc>} {
    %c0 = arith.constant 0 : index
    %c0_0 = arith.constant 0 : index
    %0 = vector.load %arg1[%c0, %c0_0] : memref<64x512xf32, #tpu.memory_space<vmem>>, vector<32x512xf32>
    %c32 = arith.constant 32 : index
    %c0_1 = arith.constant 0 : index
    %1 = vector.load %arg1[%c32, %c0_1] : memref<64x512xf32, #tpu.memory_space<vmem>>, vector<1x512xf32>
    %c40 = arith.constant 40 : index
    %c0_2 = arith.constant 0 : index
    %2 = vector.load %arg1[%c40, %c0_2] : memref<64x512xf32, #tpu.memory_space<vmem>>, vector<1x512xf32>
    %c48 = arith.constant 48 : index
    %c0_3 = arith.constant 0 : index
    %3 = vector.load %arg1[%c48, %c0_3] : memref<64x512xf32, #tpu.memory_space<vmem>>, vector<1x128xf32>
    %c56 = arith.constant 56 : index
    %c0_4 = arith.constant 0 : index
    %4 = vector.load %arg1[%c56, %c0_4] : memref<64x512xf32, #tpu.memory_space<vmem>>, vector<1x1xf32>
    %c0_5 = arith.constant 0 : index
    %c0_6 = arith.constant 0 : index
    %5 = vector.load %arg0[%c0_5, %c0_6] : memref<8x1xf32, #tpu.memory_space<vmem>>, vector<8x1xf32>
    %6 = vector.broadcast %5 : vector<8x1xf32> to vector<8x512xf32>
    %7 = vector.broadcast %1 : vector<1x512xf32> to vector<8x512xf32>
    %8 = arith.mulf %6, %7 : vector<8x512xf32>
    %9 = vector.broadcast %2 : vector<1x512xf32> to vector<8x512xf32>
    %10 = arith.addf %8, %9 : vector<8x512xf32>
    %c0_7 = arith.constant 0 : index
    %c0_8 = arith.constant 0 : index
    %11 = vector.load %arg3[%c0_7, %c0_8] : memref<8x512xf32, #tpu.memory_space<vmem>>, vector<8x512xf32>
    tpu.vector_store %arg3[%c0_7, %c0_8], %10 {strides = array<i32>} : memref<8x512xf32, #tpu.memory_space<vmem>>, vector<8x512xf32>,
    %cst = arith.constant 0.000000e+00 : f32
    %12 = vector.broadcast %cst : f32 to vector<1x128xf32>
    %cst_9 = arith.constant 0.000000e+00 : f32
    %13 = vector.broadcast %cst_9 : f32 to vector<1x128xf32>
    %c0_10 = arith.constant 0 : index
    %c0_11 = arith.constant 0 : index
    %14 = vector.load %arg3[%c0_10, %c0_11] : memref<8x512xf32, #tpu.memory_space<vmem>>, vector<1x512xf32>
    %15 = vector.extract_strided_slice %12 {offsets = [0, 0], sizes = [1, 32], strides = [1, 1]} : vector<1x128xf32> to vector<1x32xf32>
    %cst_12 = arith.constant dense<0.000000e+00> : vector<1x512xf32>
    %16 = tpu.matmul %15, %0, %cst_12 {dimension_numbers = #tpu.dot_dimension_numbers<[1], [0], [0], [1], [0, 0, 1, 1], [], []>} : vector<1x32xf32>, vector<32x512xf32>, vector<1x512xf32> -> vector<1x512xf32>
    %17 = arith.addf %14, %16 : vector<1x512xf32>
    %18 = arith.negf %17 : vector<1x512xf32>
    %19 = math.exp %18 : vector<1x512xf32>
    %cst_13 = arith.constant 1.000000e+00 : f32
    %20 = vector.broadcast %cst_13 : f32 to vector<1x512xf32>
    %21 = arith.addf %20, %19 : vector<1x512xf32>
    %22 = arith.divf %20, %21 : vector<1x512xf32>
    %23 = vector.extract_strided_slice %22 {offsets = [0, 0], sizes = [1, 128], strides = [1, 1]} : vector<1x512xf32> to vector<1x128xf32>
    %24 = vector.extract_strided_slice %22 {offsets = [0, 128], sizes = [1, 128], strides = [1, 1]} : vector<1x512xf32> to vector<1x128xf32>
    %25 = vector.extract_strided_slice %22 {offsets = [0, 256], sizes = [1, 128], strides = [1, 1]} : vector<1x512xf32> to vector<1x128xf32>
    %cst_14 = arith.constant 2.000000e+00 : f32
    %26 = vector.broadcast %cst_14 : f32 to vector<1x128xf32>
    %27 = arith.mulf %26, %25 : vector<1x128xf32>
    %cst_15 = arith.constant 1.000000e+00 : f32
    %28 = vector.broadcast %cst_15 : f32 to vector<1x128xf32>
    %29 = arith.subf %27, %28 : vector<1x128xf32>
    %30 = vector.extract_strided_slice %22 {offsets = [0, 384], sizes = [1, 128], strides = [1, 1]} : vector<1x512xf32> to vector<1x128xf32>
    %31 = arith.mulf %24, %13 : vector<1x128xf32>
    %32 = arith.mulf %23, %29 : vector<1x128xf32>
    %33 = arith.addf %31, %32 : vector<1x128xf32>
    %34 = math.tanh %33 : vector<1x128xf32>
    %35 = arith.mulf %30, %34 : vector<1x128xf32>
    %c1 = arith.constant 1 : index
    %c0_16 = arith.constant 0 : index
    %36 = vector.load %arg3[%c1, %c0_16] : memref<8x512xf32, #tpu.memory_space<vmem>>, vector<1x512xf32>
    %37 = vector.extract_strided_slice %35 {offsets = [0, 0], sizes = [1, 32], strides = [1, 1]} : vector<1x128xf32> to vector<1x32xf32>
    %cst_17 = arith.constant dense<0.000000e+00> : vector<1x512xf32>
    %38 = tpu.matmul %37, %0, %cst_17 {dimension_numbers = #tpu.dot_dimension_numbers<[1], [0], [0], [1], [0, 0, 1, 1], [], []>} : vector<1x32xf32>, vector<32x512xf32>, vector<1x512xf32> -> vector<1x512xf32>
    %39 = arith.addf %36, %38 : vector<1x512xf32>
    %40 = arith.negf %39 : vector<1x512xf32>
    %41 = math.exp %40 : vector<1x512xf32>
    %cst_18 = arith.constant 1.000000e+00 : f32
    %42 = vector.broadcast %cst_18 : f32 to vector<1x512xf32>
    %43 = arith.addf %42, %41 : vector<1x512xf32>
    %44 = arith.divf %42, %43 : vector<1x512xf32>
    %45 = vector.extract_strided_slice %44 {offsets = [0, 0], sizes = [1, 128], strides = [1, 1]} : vector<1x512xf32> to vector<1x128xf32>
    %46 = vector.extract_strided_slice %44 {offsets = [0, 128], sizes = [1, 128], strides = [1, 1]} : vector<1x512xf32> to vector<1x128xf32>
    %47 = vector.extract_strided_slice %44 {offsets = [0, 256], sizes = [1, 128], strides = [1, 1]} : vector<1x512xf32> to vector<1x128xf32>
    %cst_19 = arith.constant 2.000000e+00 : f32
    %48 = vector.broadcast %cst_19 : f32 to vector<1x128xf32>
    %49 = arith.mulf %48, %47 : vector<1x128xf32>
    %cst_20 = arith.constant 1.000000e+00 : f32
    %50 = vector.broadcast %cst_20 : f32 to vector<1x128xf32>
    %51 = arith.subf %49, %50 : vector<1x128xf32>
    %52 = vector.extract_strided_slice %44 {offsets = [0, 384], sizes = [1, 128], strides = [1, 1]} : vector<1x512xf32> to vector<1x128xf32>
    %53 = arith.mulf %46, %33 : vector<1x128xf32>
    %54 = arith.mulf %45, %51 : vector<1x128xf32>
    %55 = arith.addf %53, %54 : vector<1x128xf32>
    %56 = math.tanh %55 : vector<1x128xf32>
    %57 = arith.mulf %52, %56 : vector<1x128xf32>
    %c2 = arith.constant 2 : index
    %c0_21 = arith.constant 0 : index
    %58 = vector.load %arg3[%c2, %c0_21] : memref<8x512xf32, #tpu.memory_space<vmem>>, vector<1x512xf32>
    %59 = vector.extract_strided_slice %57 {offsets = [0, 0], sizes = [1, 32], strides = [1, 1]} : vector<1x128xf32> to vector<1x32xf32>
    %cst_22 = arith.constant dense<0.000000e+00> : vector<1x512xf32>
    %60 = tpu.matmul %59, %0, %cst_22 {dimension_numbers = #tpu.dot_dimension_numbers<[1], [0], [0], [1], [0, 0, 1, 1], [], []>} : vector<1x32xf32>, vector<32x512xf32>, vector<1x512xf32> -> vector<1x512xf32>
    %61 = arith.addf %58, %60 : vector<1x512xf32>
    %62 = arith.negf %61 : vector<1x512xf32>
    %63 = math.exp %62 : vector<1x512xf32>
    %cst_23 = arith.constant 1.000000e+00 : f32
    %64 = vector.broadcast %cst_23 : f32 to vector<1x512xf32>
    %65 = arith.addf %64, %63 : vector<1x512xf32>
    %66 = arith.divf %64, %65 : vector<1x512xf32>
    %67 = vector.extract_strided_slice %66 {offsets = [0, 0], sizes = [1, 128], strides = [1, 1]} : vector<1x512xf32> to vector<1x128xf32>
    %68 = vector.extract_strided_slice %66 {offsets = [0, 128], sizes = [1, 128], strides = [1, 1]} : vector<1x512xf32> to vector<1x128xf32>
    %69 = vector.extract_strided_slice %66 {offsets = [0, 256], sizes = [1, 128], strides = [1, 1]} : vector<1x512xf32> to vector<1x128xf32>
    %cst_24 = arith.constant 2.000000e+00 : f32
    %70 = vector.broadcast %cst_24 : f32 to vector<1x128xf32>
    %71 = arith.mulf %70, %69 : vector<1x128xf32>
    %cst_25 = arith.constant 1.000000e+00 : f32
    %72 = vector.broadcast %cst_25 : f32 to vector<1x128xf32>
    %73 = arith.subf %71, %72 : vector<1x128xf32>
    %74 = vector.extract_strided_slice %66 {offsets = [0, 384], sizes = [1, 128], strides = [1, 1]} : vector<1x512xf32> to vector<1x128xf32>
    %75 = arith.mulf %68, %55 : vector<1x128xf32>
    %76 = arith.mulf %67, %73 : vector<1x128xf32>
    %77 = arith.addf %75, %76 : vector<1x128xf32>
    %78 = math.tanh %77 : vector<1x128xf32>
    %79 = arith.mulf %74, %78 : vector<1x128xf32>
    %c3 = arith.constant 3 : index
    %c0_26 = arith.constant 0 : index
    %80 = vector.load %arg3[%c3, %c0_26] : memref<8x512xf32, #tpu.memory_space<vmem>>, vector<1x512xf32>
    %81 = vector.extract_strided_slice %79 {offsets = [0, 0], sizes = [1, 32], strides = [1, 1]} : vector<1x128xf32> to vector<1x32xf32>
    %cst_27 = arith.constant dense<0.000000e+00> : vector<1x512xf32>
    %82 = tpu.matmul %81, %0, %cst_27 {dimension_numbers = #tpu.dot_dimension_numbers<[1], [0], [0], [1], [0, 0, 1, 1], [], []>} : vector<1x32xf32>, vector<32x512xf32>, vector<1x512xf32> -> vector<1x512xf32>
    %83 = arith.addf %80, %82 : vector<1x512xf32>
    %84 = arith.negf %83 : vector<1x512xf32>
    %85 = math.exp %84 : vector<1x512xf32>
    %cst_28 = arith.constant 1.000000e+00 : f32
    %86 = vector.broadcast %cst_28 : f32 to vector<1x512xf32>
    %87 = arith.addf %86, %85 : vector<1x512xf32>
    %88 = arith.divf %86, %87 : vector<1x512xf32>
    %89 = vector.extract_strided_slice %88 {offsets = [0, 0], sizes = [1, 128], strides = [1, 1]} : vector<1x512xf32> to vector<1x128xf32>
    %90 = vector.extract_strided_slice %88 {offsets = [0, 128], sizes = [1, 128], strides = [1, 1]} : vector<1x512xf32> to vector<1x128xf32>
    %91 = vector.extract_strided_slice %88 {offsets = [0, 256], sizes = [1, 128], strides = [1, 1]} : vector<1x512xf32> to vector<1x128xf32>
    %cst_29 = arith.constant 2.000000e+00 : f32
    %92 = vector.broadcast %cst_29 : f32 to vector<1x128xf32>
    %93 = arith.mulf %92, %91 : vector<1x128xf32>
    %cst_30 = arith.constant 1.000000e+00 : f32
    %94 = vector.broadcast %cst_30 : f32 to vector<1x128xf32>
    %95 = arith.subf %93, %94 : vector<1x128xf32>
    %96 = vector.extract_strided_slice %88 {offsets = [0, 384], sizes = [1, 128], strides = [1, 1]} : vector<1x512xf32> to vector<1x128xf32>
    %97 = arith.mulf %90, %77 : vector<1x128xf32>
    %98 = arith.mulf %89, %95 : vector<1x128xf32>
    %99 = arith.addf %97, %98 : vector<1x128xf32>
    %100 = math.tanh %99 : vector<1x128xf32>
    %101 = arith.mulf %96, %100 : vector<1x128xf32>
    %c4 = arith.constant 4 : index
    %c0_31 = arith.constant 0 : index
    %102 = vector.load %arg3[%c4, %c0_31] : memref<8x512xf32, #tpu.memory_space<vmem>>, vector<1x512xf32>
    %103 = vector.extract_strided_slice %101 {offsets = [0, 0], sizes = [1, 32], strides = [1, 1]} : vector<1x128xf32> to vector<1x32xf32>
    %cst_32 = arith.constant dense<0.000000e+00> : vector<1x512xf32>
    %104 = tpu.matmul %103, %0, %cst_32 {dimension_numbers = #tpu.dot_dimension_numbers<[1], [0], [0], [1], [0, 0, 1, 1], [], []>} : vector<1x32xf32>, vector<32x512xf32>, vector<1x512xf32> -> vector<1x512xf32>
    %105 = arith.addf %102, %104 : vector<1x512xf32>
    %106 = arith.negf %105 : vector<1x512xf32>
    %107 = math.exp %106 : vector<1x512xf32>
    %cst_33 = arith.constant 1.000000e+00 : f32
    %108 = vector.broadcast %cst_33 : f32 to vector<1x512xf32>
    %109 = arith.addf %108, %107 : vector<1x512xf32>
    %110 = arith.divf %108, %109 : vector<1x512xf32>
    %111 = vector.extract_strided_slice %110 {offsets = [0, 0], sizes = [1, 128], strides = [1, 1]} : vector<1x512xf32> to vector<1x128xf32>
    %112 = vector.extract_strided_slice %110 {offsets = [0, 128], sizes = [1, 128], strides = [1, 1]} : vector<1x512xf32> to vector<1x128xf32>
    %113 = vector.extract_strided_slice %110 {offsets = [0, 256], sizes = [1, 128], strides = [1, 1]} : vector<1x512xf32> to vector<1x128xf32>
    %cst_34 = arith.constant 2.000000e+00 : f32
    %114 = vector.broadcast %cst_34 : f32 to vector<1x128xf32>
    %115 = arith.mulf %114, %113 : vector<1x128xf32>
    %cst_35 = arith.constant 1.000000e+00 : f32
    %116 = vector.broadcast %cst_35 : f32 to vector<1x128xf32>
    %117 = arith.subf %115, %116 : vector<1x128xf32>
    %118 = vector.extract_strided_slice %110 {offsets = [0, 384], sizes = [1, 128], strides = [1, 1]} : vector<1x512xf32> to vector<1x128xf32>
    %119 = arith.mulf %112, %99 : vector<1x128xf32>
    %120 = arith.mulf %111, %117 : vector<1x128xf32>
    %121 = arith.addf %119, %120 : vector<1x128xf32>
    %122 = math.tanh %121 : vector<1x128xf32>
    %123 = arith.mulf %118, %122 : vector<1x128xf32>
    %c5 = arith.constant 5 : index
    %c0_36 = arith.constant 0 : index
    %124 = vector.load %arg3[%c5, %c0_36] : memref<8x512xf32, #tpu.memory_space<vmem>>, vector<1x512xf32>
    %125 = vector.extract_strided_slice %123 {offsets = [0, 0], sizes = [1, 32], strides = [1, 1]} : vector<1x128xf32> to vector<1x32xf32>
    %cst_37 = arith.constant dense<0.000000e+00> : vector<1x512xf32>
    %126 = tpu.matmul %125, %0, %cst_37 {dimension_numbers = #tpu.dot_dimension_numbers<[1], [0], [0], [1], [0, 0, 1, 1], [], []>} : vector<1x32xf32>, vector<32x512xf32>, vector<1x512xf32> -> vector<1x512xf32>
    %127 = arith.addf %124, %126 : vector<1x512xf32>
    %128 = arith.negf %127 : vector<1x512xf32>
    %129 = math.exp %128 : vector<1x512xf32>
    %cst_38 = arith.constant 1.000000e+00 : f32
    %130 = vector.broadcast %cst_38 : f32 to vector<1x512xf32>
    %131 = arith.addf %130, %129 : vector<1x512xf32>
    %132 = arith.divf %130, %131 : vector<1x512xf32>
    %133 = vector.extract_strided_slice %132 {offsets = [0, 0], sizes = [1, 128], strides = [1, 1]} : vector<1x512xf32> to vector<1x128xf32>
    %134 = vector.extract_strided_slice %132 {offsets = [0, 128], sizes = [1, 128], strides = [1, 1]} : vector<1x512xf32> to vector<1x128xf32>
    %135 = vector.extract_strided_slice %132 {offsets = [0, 256], sizes = [1, 128], strides = [1, 1]} : vector<1x512xf32> to vector<1x128xf32>
    %cst_39 = arith.constant 2.000000e+00 : f32
    %136 = vector.broadcast %cst_39 : f32 to vector<1x128xf32>
    %137 = arith.mulf %136, %135 : vector<1x128xf32>
    %cst_40 = arith.constant 1.000000e+00 : f32
    %138 = vector.broadcast %cst_40 : f32 to vector<1x128xf32>
    %139 = arith.subf %137, %138 : vector<1x128xf32>
    %140 = vector.extract_strided_slice %132 {offsets = [0, 384], sizes = [1, 128], strides = [1, 1]} : vector<1x512xf32> to vector<1x128xf32>
    %141 = arith.mulf %134, %121 : vector<1x128xf32>
    %142 = arith.mulf %133, %139 : vector<1x128xf32>
    %143 = arith.addf %141, %142 : vector<1x128xf32>
    %144 = math.tanh %143 : vector<1x128xf32>
    %145 = arith.mulf %140, %144 : vector<1x128xf32>
    %c6 = arith.constant 6 : index
    %c0_41 = arith.constant 0 : index
    %146 = vector.load %arg3[%c6, %c0_41] : memref<8x512xf32, #tpu.memory_space<vmem>>, vector<1x512xf32>
    %147 = vector.extract_strided_slice %145 {offsets = [0, 0], sizes = [1, 32], strides = [1, 1]} : vector<1x128xf32> to vector<1x32xf32>
    %cst_42 = arith.constant dense<0.000000e+00> : vector<1x512xf32>
    %148 = tpu.matmul %147, %0, %cst_42 {dimension_numbers = #tpu.dot_dimension_numbers<[1], [0], [0], [1], [0, 0, 1, 1], [], []>} : vector<1x32xf32>, vector<32x512xf32>, vector<1x512xf32> -> vector<1x512xf32>
    %149 = arith.addf %146, %148 : vector<1x512xf32>
    %150 = arith.negf %149 : vector<1x512xf32>
    %151 = math.exp %150 : vector<1x512xf32>
    %cst_43 = arith.constant 1.000000e+00 : f32
    %152 = vector.broadcast %cst_43 : f32 to vector<1x512xf32>
    %153 = arith.addf %152, %151 : vector<1x512xf32>
    %154 = arith.divf %152, %153 : vector<1x512xf32>
    %155 = vector.extract_strided_slice %154 {offsets = [0, 0], sizes = [1, 128], strides = [1, 1]} : vector<1x512xf32> to vector<1x128xf32>
    %156 = vector.extract_strided_slice %154 {offsets = [0, 128], sizes = [1, 128], strides = [1, 1]} : vector<1x512xf32> to vector<1x128xf32>
    %157 = vector.extract_strided_slice %154 {offsets = [0, 256], sizes = [1, 128], strides = [1, 1]} : vector<1x512xf32> to vector<1x128xf32>
    %cst_44 = arith.constant 2.000000e+00 : f32
    %158 = vector.broadcast %cst_44 : f32 to vector<1x128xf32>
    %159 = arith.mulf %158, %157 : vector<1x128xf32>
    %cst_45 = arith.constant 1.000000e+00 : f32
    %160 = vector.broadcast %cst_45 : f32 to vector<1x128xf32>
    %161 = arith.subf %159, %160 : vector<1x128xf32>
    %162 = vector.extract_strided_slice %154 {offsets = [0, 384], sizes = [1, 128], strides = [1, 1]} : vector<1x512xf32> to vector<1x128xf32>
    %163 = arith.mulf %156, %143 : vector<1x128xf32>
    %164 = arith.mulf %155, %161 : vector<1x128xf32>
    %165 = arith.addf %163, %164 : vector<1x128xf32>
    %166 = math.tanh %165 : vector<1x128xf32>
    %167 = arith.mulf %162, %166 : vector<1x128xf32>
    %c7 = arith.constant 7 : index
    %c0_46 = arith.constant 0 : index
    %168 = vector.load %arg3[%c7, %c0_46] : memref<8x512xf32, #tpu.memory_space<vmem>>, vector<1x512xf32>
    %169 = vector.extract_strided_slice %167 {offsets = [0, 0], sizes = [1, 32], strides = [1, 1]} : vector<1x128xf32> to vector<1x32xf32>
    %cst_47 = arith.constant dense<0.000000e+00> : vector<1x512xf32>
    %170 = tpu.matmul %169, %0, %cst_47 {dimension_numbers = #tpu.dot_dimension_numbers<[1], [0], [0], [1], [0, 0, 1, 1], [], []>} : vector<1x32xf32>, vector<32x512xf32>, vector<1x512xf32> -> vector<1x512xf32>
    %171 = arith.addf %168, %170 : vector<1x512xf32>
    %172 = arith.negf %171 : vector<1x512xf32>
    %173 = math.exp %172 : vector<1x512xf32>
    %cst_48 = arith.constant 1.000000e+00 : f32
    %174 = vector.broadcast %cst_48 : f32 to vector<1x512xf32>
    %175 = arith.addf %174, %173 : vector<1x512xf32>
    %176 = arith.divf %174, %175 : vector<1x512xf32>
    %177 = vector.extract_strided_slice %176 {offsets = [0, 0], sizes = [1, 128], strides = [1, 1]} : vector<1x512xf32> to vector<1x128xf32>
    %178 = vector.extract_strided_slice %176 {offsets = [0, 128], sizes = [1, 128], strides = [1, 1]} : vector<1x512xf32> to vector<1x128xf32>
    %179 = vector.extract_strided_slice %176 {offsets = [0, 256], sizes = [1, 128], strides = [1, 1]} : vector<1x512xf32> to vector<1x128xf32>
    %cst_49 = arith.constant 2.000000e+00 : f32
    %180 = vector.broadcast %cst_49 : f32 to vector<1x128xf32>
    %181 = arith.mulf %180, %179 : vector<1x128xf32>
    %cst_50 = arith.constant 1.000000e+00 : f32
    %182 = vector.broadcast %cst_50 : f32 to vector<1x128xf32>
    %183 = arith.subf %181, %182 : vector<1x128xf32>
    %184 = vector.extract_strided_slice %176 {offsets = [0, 384], sizes = [1, 128], strides = [1, 1]} : vector<1x512xf32> to vector<1x128xf32>
    %185 = arith.mulf %178, %165 : vector<1x128xf32>
    %186 = arith.mulf %177, %183 : vector<1x128xf32>
    %187 = arith.addf %185, %186 : vector<1x128xf32>
    %188 = math.tanh %187 : vector<1x128xf32>
    %189 = arith.mulf %184, %188 : vector<1x128xf32>
    %190 = arith.mulf %189, %3 : vector<1x128xf32>
    %cst_51 = arith.constant dense<0.000000e+00> : vector<1xf32>
    %191 = vector.multi_reduction <add>, %190, %cst_51 [1] : vector<1x128xf32> to vector<1xf32>
    %192 = vector.shape_cast %191 : vector<1xf32> to vector<1x1xf32>
    %193 = arith.addf %192, %4 : vector<1x1xf32>
    %c0_52 = arith.constant 0 : index
    %c0_53 = arith.constant 0 : index
    %194 = vector.load %arg2[%c0_52, %c0_53] : memref<1x1xf32, #tpu.memory_space<vmem>>, vector<1x1xf32>
    tpu.vector_store %arg2[%c0_52, %c0_53], %193 {strides = array<i32>} : memref<1x1xf32, #tpu.memory_space<vmem>>, vector<1x1xf32>,
    return
  }
}

</mosaic_0001>

<bundles_post_ra>
// kernel: tpu_custom_call.1
= control target key start
LH: loop header
LB: loop body
LE: loop exit
PB: predicated region body
PF: predicated region fallthrough
CT: control target
= control target key end

     0   :  { %7 = vsyncpa [#allocation4], 0  ;;  %s2156_s0 = inlined_call_operand.vmem [shape: f32[8,1], index: 0, kind: input, shape index: {}]   ;;  %s2157_s1 = inlined_call_operand.hbm [shape: f32[64,512], index: 1, kind: input, shape index: {}]   ;;  %s2158_s2 = inlined_call_operand.hbm [shape: f32[1,1], index: 2, kind: output, shape index: {}]  }
   0x1   :  { %8 = vsyncpa [#allocation5], 0  ;;  %s1969_s9 = smov [#allocation3]   ;;  %s1921_s13 = scalar_lea.hbm %s2157_s1, 4096 }
   0x2   :  { %s16_s10 = sshll.u32 %s1969_s9, 4  ;;  %p1922_p0 = scmp.ne.s32.totalorder %s2157_s1, %s1921_s13  ;;  %s17_s10 = int_to_ptr.vmem [resolvable:$true] %s16_s10 }
   0x3   :  { %p1925_p1 = scmp.lt.u32.totalorder %s1921_s13, %s2157_s1 }
   0x5   :  { %p1927_p2 = pnand %p1925_p1, %p1922_p0 }
   0x7   :  { %1930 = shalt.err (!%p1927_p2)
}
   0x8   :  { %s1931_s18 = scalar_lea.vmem %s17_s10, 4096  ;;  %p1936_p4 = scmp.lt.s32.totalorder %s17_s10, %s17_s10 }
   0x9   :  { %p1932_p3 = scmp.ne.s32.totalorder %s17_s10, %s1931_s18  ;;  %p1937_p5 = scmp.lt.s32.totalorder %s1931_s18, %s1931_s18 }
   0xb   :  { %p1938_p6 = por %p1937_p5, %p1936_p4 }
   0xd   :  { %p1939_p7 = pnand %p1938_p6, %p1932_p3 }
   0xf   :  { %1942 = shalt.err (!%p1939_p7)
}
  0x10   :  { %s1970_s19 = smov 512   ;;  %s1971_s20 = smov 32  }
  0x11   :  { %22 = dma.hbm_to_vmem [thread:$0]  %s2157_s1, 4096, %s17_s10, [#allocation4], %s1970_s19, %s1970_s19, %s1971_s20  }
  0x12   :  { %1965 = dma.done.wait [#allocation4], 4096  }
  0x13   :  { %1966 = vsyncadd [#allocation4], 4294963200  ;;  %v1972_v0 = vmov 0.0   ;;  %v1973_v1 = vmov 0   ;;  %v27_v2 = vld [vmem:[#allocation3 + $0x8] sm:$0xff]  ;;  %v29_v4 = vld [vmem:[#allocation3 + $0x18] sm:$0xff]  ;;  %v55_v27 = vlaneseq }
  0x14   :  { %177 = vmatprep.mubr.f32.mxu0 %v1972_v0  ;;  %248 = vmatprep.mubr.f32.mxu1 %v1972_v0  ;;  %v31_v3 = vld [vmem:[#allocation3 + $0x28] sm:$0xff]  ;;  %v33_v6 = vld [vmem:[#allocation3 + $0x38] sm:$0xff]  ;;  %v26_v7 = vld [vmem:[#allocation3] sm:$0xff]  ;;  %v1974_v52 = vmov 1966171168   ;;  %vm109_vm0 = vcmask 261120  }
  0x15   :  { %1872 = vset.pattern.permute.xlu0 %v1973_v1  ;;  %v2005_v5 = vpack.c.bf16 %v31_v3, %v27_v2  ;;  %v30_v8 = vld [vmem:[#allocation3 + $0x20] sm:$0xff]  ;;  %v2007_v9 = vpack.c.bf16 %v33_v6, %v29_v4  ;;  %v28_v11 = vld [vmem:[#allocation3 + $0x10] sm:$0xff]  ;;  %v35_v13 = vld [vmem:[#allocation3 + $0x48] sm:$0xff]  ;;  %v56_v28 = vshrl.u32 %v55_v27, 7  ;;  %v262_v53 = vunpack.c.l.s4 %v1974_v52 }
  0x16   :  { %v2009_v10 = vpack.c.bf16 %v30_v8, %v26_v7  ;;  %v32_v12 = vld [vmem:[#allocation3 + $0x30] sm:$0xff]  ;;  %v39_v15 = vld [vmem:[#allocation3 + $0x68] sm:$0xff]  ;;  %v37_v16 = vld [vmem:[#allocation3 + $0x58] sm:$0xff]  ;;  %vm1685_vm1 = vcmask 1040384   ;;  %vm1690_vm2 = vcmask 0  }
  0x17   :  { %1738 = vmatprep.subr.bf16.mxu0 %v2005_v5  ;;  %v2012_v14 = vpack.c.bf16 %v32_v12, %v28_v11  ;;  %v41_v17 = vld [vmem:[#allocation3 + $0x78] sm:$0xff]  ;;  %1746 = vmatprep.subr.bf16.mxu1 %v2007_v9  ;;  %v2016_v18 = vpack.c.bf16 %v39_v15, %v35_v13  ;;  %v34_v20 = vld [vmem:[#allocation3 + $0x40] sm:$0xff]  ;;  %v36_v22 = vld [vmem:[#allocation3 + $0x50] sm:$0xff]  ;;  %v57_v29 = vsub.s32 0, %v56_v28  ;;  %v61_v30 = vsub.s32 1, %v56_v28 }
  0x18   :  { %1740 = vmatpush1.bf16.msra.mxu0 %v2009_v10  ;;  %v2018_v19 = vpack.c.bf16 %v41_v17, %v37_v16  ;;  %v38_v21 = vld [vmem:[#allocation3 + $0x60] sm:$0xff]  ;;  %v40_v24 = vld [vmem:[#allocation3 + $0x70] sm:$0xff]  ;;  %v65_v31 = vsub.s32 2, %v56_v28  ;;  %v69_v32 = vsub.s32 3, %v56_v28  ;;  %v263_v54 = vunpack.c.0.s8 %v262_v53 }
  0x19   :  { %1748 = vmatpush1.bf16.msra.mxu1 %v2012_v14  ;;  %v2021_v23 = vpack.c.bf16 %v38_v21, %v34_v20  ;;  %v48_v25 = vld [vmem:[%s2156_s0] sm:$0xff]  ;;  %1742 = vmatprep.subr.bf16.mxu0 %v2016_v18  ;;  %v2028_v26 = vpack.c.bf16 %v40_v24, %v36_v22  ;;  %s1975_s0 = smov [#allocation6]  }
  0x1a   :  { %1750 = vmatprep.subr.bf16.mxu1 %v2018_v19  ;;  %51 = vperm.xlu0 %1872, %v48_v25   ;;  %v43_v33 = vld [vmem:[#allocation3 + $0x80] ss:$8 sm:$0xf]  ;;  %v2046_v55 = vsub.s32 %v263_v54, %v56_v28  ;;  %s1698_s24 = sshll.u32 %s1975_s0, 4  ;;  %s1699_s24 = int_to_ptr.vmem [resolvable:$true] %s1698_s24 }
  0x1b   :  { %v45_v34 = vld [vmem:[#allocation3 + $0xa0] ss:$8 sm:$0xf]  ;;  %v58_v35 = vrot.slane %v43_v33, %v57_v29  ;;  %v62_v36 = vrot.slane %v43_v33, %v61_v30  ;;  %v66_v37 = vrot.slane %v43_v33, %v65_v31  ;;  %v70_v38 = vrot.slane %v43_v33, %v69_v32  ;;  %s1943_s25 = scalar_lea.vmem %s1699_s24, 16  ;;  %s1947_s26 = scalar_lea.vmem %s1699_s24, 32 }
  0x1c   :  { %1744 = vmatpush1.bf16.msra.mxu0 %v2021_v23  ;;  %v83_v39 = vrot.slane %v45_v34, %v57_v29  ;;  %v87_v40 = vrot.slane %v45_v34, %v61_v30  ;;  %v91_v41 = vrot.slane %v45_v34, %v65_v31  ;;  %v95_v42 = vrot.slane %v45_v34, %v69_v32  ;;  %p1944_p8 = scmp.ne.s32.totalorder %s1699_s24, %s1943_s25  ;;  %p1948_p9 = scmp.lt.s32.totalorder %s1699_s24, %s1699_s24 }
  0x1d   :  { %1752 = vmatpush1.bf16.msra.mxu1 %v2028_v26  ;;  %1754 = vmatprep.subr.bf16.mxu0 %v2005_v5  ;;  %p1949_p10 = scmp.lt.s32.totalorder %s1947_s26, %s1943_s25 }
  0x1e   :  { %1762 = vmatprep.subr.bf16.mxu1 %v2007_v9 }
  0x1f   :  { %178 = vmatmul.mubr.f32.vlgmr.msra.gmra.mrb[0].mxu0 %v1972_v0  ;;  %p1950_p11 = por %p1949_p10, %p1948_p9 }
  0x20   :  { %249 = vmatmul.mubr.f32.vlgmr.msra.gmra.mrb[0].mxu1 %v1972_v0  ;;  %1756 = vmatpush1.bf16.msra.mxu0 %v2009_v10 }
  0x21   :  { %1764 = vmatpush1.bf16.msra.mxu1 %v2012_v14  ;;  %1758 = vmatprep.subr.bf16.mxu0 %v2016_v18  ;;  %p1951_p12 = pnand %p1950_p11, %p1944_p8 }
  0x22   :  { %1766 = vmatprep.subr.bf16.mxu1 %v2018_v19  ;;  %374 = vmatprep.mubr.f32.mxu0 %v1972_v0 }
  0x23   :  { %445 = vmatprep.mubr.f32.mxu1 %v1972_v0 }
  0x24   :  { %1760 = vmatpush1.bf16.msra.mxu0 %v2021_v23 }
  0x25   :  { %1768 = vmatpush1.bf16.msra.mxu1 %v2028_v26  ;;  %1770 = vmatprep.subr.bf16.mxu0 %v2005_v5 }
  0x26   :  { %1778 = vmatprep.subr.bf16.mxu1 %v2007_v9 }
  0x99   :  { %v52_v43 = vpop.permute.xlu0 %51 }
  0x9a   :  { %v75_v44 = vmul.f32 %v58_v35, %v52_v43  ;;  %v76_v45 = vmul.f32 %v62_v36, %v52_v43  ;;  %v77_v46 = vmul.f32 %v66_v37, %v52_v43  ;;  %v78_v47 = vmul.f32 %v70_v38, %v52_v43 }
  0x9c   :  { %v100_v48 = vadd.f32 %v83_v39, %v75_v44  ;;  %v101_v49 = vadd.f32 %v87_v40, %v76_v45  ;;  %v102_v50 = vadd.f32 %v91_v41, %v77_v46  ;;  %v103_v51 = vadd.f32 %v95_v42, %v78_v47 }
  0x9e   :  { %104 = vst [vmem:[#allocation2] sm:$0xff] %v100_v48  ;;  %105 = vst [vmem:[#allocation2 + $0x8] sm:$0xff] %v101_v49 }
  0x9f   :  { %106 = vst [vmem:[#allocation2 + $0x10] sm:$0xff] %v102_v50  ;;  %107 = vst [vmem:[#allocation2 + $0x18] sm:$0xff] %v103_v51 }
  0xa6   :  { %v108_v2 = vld [vmem:[#allocation2] ss:$8 sm:$0xf]  ;;  %v306_v37 = vld [vmem:[#allocation2 + $0x1] ss:$8 sm:$0xf] }
  0xf2   :  { %v179_v56 = vpop.f32.mrb[0].mxu0 }
  0xf3   :  { %v250_v57 = vpop.f32.mrb[0].mxu1  ;;  %v181_v58 = vpop.f32.mrb[1].mxu0 }
  0xf4   :  { %v259_v59 = vcombine.low %v179_v56, %v181_v58  ;;  %v252_v60 = vpop.f32.mrb[1].mxu1 }
  0xf5   :  { %v260_v61 = vcombine.low %v250_v57, %v252_v60 }
  0xf6   :  { %v267_v62 = vrot.slane %v259_v59, %v2046_v55 }
  0xf7   :  { %v274_v63 = vrot.slane %v260_v61, %v2046_v55 }
  0xf9   :  { %v275_v1 = vcombine.low %v267_v62, %v274_v63 }
  0xfb   :  { %v282_v3 = vrot.slane %v275_v1, %v2046_v55  ;;  %v503_v1 = vld [vmem:[#allocation2 + $0x2] ss:$8 sm:$0xf] }
  0xfd   :  { %v284_v4 = vadd.f32 %v282_v3, %v108_v2 }
  0xff   :  { %v1707_v6 = vmul.f32 -1.442695, %v284_v4 }
 0x101   :  { %1873 = vpow2.f32 %v1707_v6 }
 0x10b   :  { %v1874_v7 = vpop.eup %1873 }
 0x10c   :  { %v288_v8 = vadd.f32 1.0, %v1874_v7 }
 0x10e   :  { %1875 = vrcp.f32 %v288_v8 }
 0x118   :  { %v1876_v11 = vpop.eup %1875 }
 0x119   :  { %v292_v12 = vrot.slane %v1876_v11, 2  ;;  %v296_v15 = vrot.slane %v1876_v11, 1  ;;  %v302_v22 = vrot.slane %v1876_v11, 3 }
 0x11b   :  { %v294_v13 = vmul.f32 2.0, %v292_v12  ;;  %v298_v17 = vmul.f32 0.0, %v296_v15 }
 0x11d   :  { %v1708_v16 = vadd.f32 -1.0, %v294_v13 }
 0x11f   :  { %v299_v20 = vmul.f32 %v1876_v11, %v1708_v16 }
 0x121   :  { %v300_v21 = vadd.f32 %v299_v20, %v298_v17 }
 0x123   :  { %1877 = vtanh.f32 %v300_v21 }
 0x12d   :  { %v1878_v24 = vpop.eup %1877 }
 0x12e   :  { %v304_v25 = vmul.f32 %v1878_v24, %v302_v22 }
 0x130   :  { %1709 = vmatmul.mubr.msk.f32.vlgmr.msra.gmra.mrb[2].mxu0 %vm109_vm0, %v304_v25  ;;  %1710 = vmatmul.mubr.msk.f32.vlgmr.msra.gmra.mrb[2].mxu1 %vm109_vm0, %v304_v25 }
 0x131   :  { %1772 = vmatpush1.bf16.msra.mxu0 %v2009_v10  ;;  %1780 = vmatpush1.bf16.msra.mxu1 %v2012_v14 }
 0x132   :  { %1774 = vmatprep.subr.bf16.mxu0 %v2016_v18  ;;  %1782 = vmatprep.subr.bf16.mxu1 %v2018_v19 }
 0x133   :  { %571 = vmatprep.mubr.f32.mxu0 %v1972_v0  ;;  %642 = vmatprep.mubr.f32.mxu1 %v1972_v0 }
 0x135   :  { %1776 = vmatpush1.bf16.msra.mxu0 %v2021_v23  ;;  %1784 = vmatpush1.bf16.msra.mxu1 %v2028_v26 }
 0x136   :  { %1786 = vmatprep.subr.bf16.mxu0 %v2005_v5  ;;  %1794 = vmatprep.subr.bf16.mxu1 %v2007_v9 }
 0x203   :  { %v376_v27 = vpop.f32.mrb[2].mxu0  ;;  %v447_v28 = vpop.f32.mrb[2].mxu1 }
 0x204   :  { %v378_v29 = vpop.f32.mrb[3].mxu0  ;;  %v449_v30 = vpop.f32.mrb[3].mxu1 }
 0x205   :  { %v456_v31 = vcombine.low %v376_v27, %v378_v29  ;;  %v457_v32 = vcombine.low %v447_v28, %v449_v30 }
 0x207   :  { %v464_v33 = vrot.slane %v456_v31, %v2046_v55  ;;  %v471_v34 = vrot.slane %v457_v32, %v2046_v55 }
 0x209   :  { %v472_v35 = vcombine.low %v464_v33, %v471_v34 }
 0x20b   :  { %v479_v36 = vrot.slane %v472_v35, %v2046_v55  ;;  %v700_v35 = vld [vmem:[#allocation2 + $0x3] ss:$8 sm:$0xf] }
 0x20d   :  { %v481_v38 = vadd.f32 %v479_v36, %v306_v37 }
 0x20f   :  { %v1711_v39 = vmul.f32 -1.442695, %v481_v38 }
 0x211   :  { %1879 = vpow2.f32 %v1711_v39 }
 0x21b   :  { %v1880_v40 = vpop.eup %1879 }
 0x21c   :  { %v485_v41 = vadd.f32 1.0, %v1880_v40 }
 0x21e   :  { %1881 = vrcp.f32 %v485_v41 }
 0x228   :  { %v1882_v42 = vpop.eup %1881 }
 0x229   :  { %v489_v43 = vrot.slane %v1882_v42, 2  ;;  %v493_v45 = vrot.slane %v1882_v42, 1  ;;  %v499_v50 = vrot.slane %v1882_v42, 3 }
 0x22b   :  { %v491_v44 = vmul.f32 2.0, %v489_v43  ;;  %v495_v47 = vmul.f32 %v493_v45, %v300_v21 }
 0x22d   :  { %v1712_v46 = vadd.f32 -1.0, %v491_v44 }
 0x22f   :  { %v496_v48 = vmul.f32 %v1882_v42, %v1712_v46 }
 0x231   :  { %v497_v49 = vadd.f32 %v496_v48, %v495_v47 }
 0x233   :  { %1883 = vtanh.f32 %v497_v49 }
 0x23d   :  { %v1884_v51 = vpop.eup %1883 }
 0x23e   :  { %v501_v52 = vmul.f32 %v1884_v51, %v499_v50 }
 0x240   :  { %1713 = vmatmul.mubr.msk.f32.vlgmr.msra.gmra.mrb[4].mxu0 %vm109_vm0, %v501_v52  ;;  %1714 = vmatmul.mubr.msk.f32.vlgmr.msra.gmra.mrb[4].mxu1 %vm109_vm0, %v501_v52 }
 0x241   :  { %1788 = vmatpush1.bf16.msra.mxu0 %v2009_v10  ;;  %1796 = vmatpush1.bf16.msra.mxu1 %v2012_v14 }
 0x242   :  { %1790 = vmatprep.subr.bf16.mxu0 %v2016_v18  ;;  %1798 = vmatprep.subr.bf16.mxu1 %v2018_v19 }
 0x243   :  { %768 = vmatprep.mubr.f32.mxu0 %v1972_v0  ;;  %839 = vmatprep.mubr.f32.mxu1 %v1972_v0 }
 0x245   :  { %1792 = vmatpush1.bf16.msra.mxu0 %v2021_v23  ;;  %1800 = vmatpush1.bf16.msra.mxu1 %v2028_v26 }
 0x246   :  { %1802 = vmatprep.subr.bf16.mxu0 %v2005_v5  ;;  %1810 = vmatprep.subr.bf16.mxu1 %v2007_v9 }
 0x313   :  { %v573_v53 = vpop.f32.mrb[4].mxu0  ;;  %v644_v54 = vpop.f32.mrb[4].mxu1 }
 0x314   :  { %v575_v56 = vpop.f32.mrb[5].mxu0  ;;  %v646_v57 = vpop.f32.mrb[5].mxu1 }
 0x315   :  { %v653_v58 = vcombine.low %v573_v53, %v575_v56  ;;  %v654_v59 = vcombine.low %v644_v54, %v646_v57 }
 0x317   :  { %v661_v60 = vrot.slane %v653_v58, %v2046_v55  ;;  %v668_v61 = vrot.slane %v654_v59, %v2046_v55 }
 0x319   :  { %v669_v62 = vcombine.low %v661_v60, %v668_v61 }
 0x31b   :  { %v676_v63 = vrot.slane %v669_v62, %v2046_v55  ;;  %v897_v62 = vld [vmem:[#allocation2 + $0x4] ss:$8 sm:$0xf] }
 0x31d   :  { %v678_v2 = vadd.f32 %v676_v63, %v503_v1 }
 0x31f   :  { %v1715_v3 = vmul.f32 -1.442695, %v678_v2 }
 0x321   :  { %1885 = vpow2.f32 %v1715_v3 }
 0x32b   :  { %v1886_v4 = vpop.eup %1885 }
 0x32c   :  { %v682_v6 = vadd.f32 1.0, %v1886_v4 }
 0x32e   :  { %1887 = vrcp.f32 %v682_v6 }
 0x338   :  { %v1888_v7 = vpop.eup %1887 }
 0x339   :  { %v686_v8 = vrot.slane %v1888_v7, 2  ;;  %v690_v12 = vrot.slane %v1888_v7, 1  ;;  %v696_v20 = vrot.slane %v1888_v7, 3 }
 0x33b   :  { %v688_v11 = vmul.f32 2.0, %v686_v8  ;;  %v692_v15 = vmul.f32 %v690_v12, %v497_v49 }
 0x33d   :  { %v1716_v13 = vadd.f32 -1.0, %v688_v11 }
 0x33f   :  { %v693_v16 = vmul.f32 %v1888_v7, %v1716_v13 }
 0x341   :  { %v694_v17 = vadd.f32 %v693_v16, %v692_v15 }
 0x343   :  { %1889 = vtanh.f32 %v694_v17 }
 0x34d   :  { %v1890_v21 = vpop.eup %1889 }
 0x34e   :  { %v698_v22 = vmul.f32 %v1890_v21, %v696_v20 }
 0x350   :  { %1717 = vmatmul.mubr.msk.f32.vlgmr.msra.gmra.mrb[6].mxu0 %vm109_vm0, %v698_v22  ;;  %1718 = vmatmul.mubr.msk.f32.vlgmr.msra.gmra.mrb[6].mxu1 %vm109_vm0, %v698_v22 }
 0x351   :  { %1804 = vmatpush1.bf16.msra.mxu0 %v2009_v10  ;;  %1812 = vmatpush1.bf16.msra.mxu1 %v2012_v14 }
 0x352   :  { %1806 = vmatprep.subr.bf16.mxu0 %v2016_v18  ;;  %1814 = vmatprep.subr.bf16.mxu1 %v2018_v19 }
 0x353   :  { %965 = vmatprep.mubr.f32.mxu0 %v1972_v0  ;;  %1036 = vmatprep.mubr.f32.mxu1 %v1972_v0 }
 0x355   :  { %1808 = vmatpush1.bf16.msra.mxu0 %v2021_v23  ;;  %1816 = vmatpush1.bf16.msra.mxu1 %v2028_v26 }
 0x356   :  { %1818 = vmatprep.subr.bf16.mxu0 %v2005_v5  ;;  %1826 = vmatprep.subr.bf16.mxu1 %v2007_v9 }
 0x423   :  { %v770_v24 = vpop.f32.mrb[6].mxu0  ;;  %v841_v25 = vpop.f32.mrb[6].mxu1 }
 0x424   :  { %v772_v27 = vpop.f32.mrb[7].mxu0  ;;  %v843_v28 = vpop.f32.mrb[7].mxu1 }
 0x425   :  { %v850_v29 = vcombine.low %v770_v24, %v772_v27  ;;  %v851_v30 = vcombine.low %v841_v25, %v843_v28 }
 0x427   :  { %v858_v31 = vrot.slane %v850_v29, %v2046_v55  ;;  %v865_v32 = vrot.slane %v851_v30, %v2046_v55 }
 0x429   :  { %v866_v33 = vcombine.low %v858_v31, %v865_v32 }
 0x42b   :  { %v873_v34 = vrot.slane %v866_v33, %v2046_v55  ;;  %v1094_v33 = vld [vmem:[#allocation2 + $0x5] ss:$8 sm:$0xf] }
 0x42d   :  { %v875_v36 = vadd.f32 %v873_v34, %v700_v35 }
 0x42f   :  { %v1719_v37 = vmul.f32 -1.442695, %v875_v36 }
 0x431   :  { %1891 = vpow2.f32 %v1719_v37 }
 0x43b   :  { %v1892_v38 = vpop.eup %1891 }
 0x43c   :  { %v879_v39 = vadd.f32 1.0, %v1892_v38 }
 0x43e   :  { %1893 = vrcp.f32 %v879_v39 }
 0x448   :  { %v1894_v40 = vpop.eup %1893 }
 0x449   :  { %v883_v41 = vrot.slane %v1894_v40, 2  ;;  %v887_v43 = vrot.slane %v1894_v40, 1  ;;  %v893_v48 = vrot.slane %v1894_v40, 3 }
 0x44b   :  { %v885_v42 = vmul.f32 2.0, %v883_v41  ;;  %v889_v45 = vmul.f32 %v887_v43, %v694_v17 }
 0x44d   :  { %v1720_v44 = vadd.f32 -1.0, %v885_v42 }
 0x44f   :  { %v890_v46 = vmul.f32 %v1894_v40, %v1720_v44 }
 0x451   :  { %v891_v47 = vadd.f32 %v890_v46, %v889_v45 }
 0x453   :  { %1895 = vtanh.f32 %v891_v47 }
 0x45d   :  { %v1896_v49 = vpop.eup %1895 }
 0x45e   :  { %v895_v50 = vmul.f32 %v1896_v49, %v893_v48 }
 0x460   :  { %1721 = vmatmul.mubr.msk.f32.vlgmr.msra.gmra.mrb[8].mxu0 %vm109_vm0, %v895_v50  ;;  %1722 = vmatmul.mubr.msk.f32.vlgmr.msra.gmra.mrb[8].mxu1 %vm109_vm0, %v895_v50 }
 0x461   :  { %1820 = vmatpush1.bf16.msra.mxu0 %v2009_v10  ;;  %1828 = vmatpush1.bf16.msra.mxu1 %v2012_v14 }
 0x462   :  { %1822 = vmatprep.subr.bf16.mxu0 %v2016_v18  ;;  %1830 = vmatprep.subr.bf16.mxu1 %v2018_v19 }
 0x463   :  { %1162 = vmatprep.mubr.f32.mxu0 %v1972_v0  ;;  %1233 = vmatprep.mubr.f32.mxu1 %v1972_v0 }
 0x465   :  { %1824 = vmatpush1.bf16.msra.mxu0 %v2021_v23  ;;  %1832 = vmatpush1.bf16.msra.mxu1 %v2028_v26 }
 0x466   :  { %1834 = vmatprep.subr.bf16.mxu0 %v2005_v5  ;;  %1842 = vmatprep.subr.bf16.mxu1 %v2007_v9 }
 0x533   :  { %v967_v51 = vpop.f32.mrb[8].mxu0  ;;  %v1038_v52 = vpop.f32.mrb[8].mxu1 }
 0x534   :  { %v969_v53 = vpop.f32.mrb[9].mxu0  ;;  %v1040_v54 = vpop.f32.mrb[9].mxu1 }
 0x535   :  { %v1047_v56 = vcombine.low %v967_v51, %v969_v53  ;;  %v1048_v57 = vcombine.low %v1038_v52, %v1040_v54  ;;  %v1291_v53 = vld [vmem:[#allocation2 + $0x6] ss:$8 sm:$0xf] }
 0x537   :  { %v1055_v58 = vrot.slane %v1047_v56, %v2046_v55  ;;  %v1062_v59 = vrot.slane %v1048_v57, %v2046_v55 }
 0x539   :  { %v1063_v60 = vcombine.low %v1055_v58, %v1062_v59 }
 0x53b   :  { %v1070_v61 = vrot.slane %v1063_v60, %v2046_v55 }
 0x53d   :  { %v1072_v63 = vadd.f32 %v1070_v61, %v897_v62 }
 0x53f   :  { %v1723_v1 = vmul.f32 -1.442695, %v1072_v63 }
 0x541   :  { %1897 = vpow2.f32 %v1723_v1 }
 0x54b   :  { %v1898_v2 = vpop.eup %1897 }
 0x54c   :  { %v1076_v3 = vadd.f32 1.0, %v1898_v2 }
 0x54e   :  { %1899 = vrcp.f32 %v1076_v3 }
 0x558   :  { %v1900_v4 = vpop.eup %1899 }
 0x559   :  { %v1080_v6 = vrot.slane %v1900_v4, 2  ;;  %v1084_v8 = vrot.slane %v1900_v4, 1  ;;  %v1090_v16 = vrot.slane %v1900_v4, 3 }
 0x55b   :  { %v1082_v7 = vmul.f32 2.0, %v1080_v6  ;;  %v1086_v12 = vmul.f32 %v1084_v8, %v891_v47 }
 0x55d   :  { %v1724_v11 = vadd.f32 -1.0, %v1082_v7 }
 0x55f   :  { %v1087_v13 = vmul.f32 %v1900_v4, %v1724_v11 }
 0x561   :  { %v1088_v15 = vadd.f32 %v1087_v13, %v1086_v12 }
 0x563   :  { %1901 = vtanh.f32 %v1088_v15 }
 0x56d   :  { %v1902_v17 = vpop.eup %1901 }
 0x56e   :  { %v1092_v20 = vmul.f32 %v1902_v17, %v1090_v16 }
 0x570   :  { %1725 = vmatmul.mubr.msk.f32.vlgmr.msra.gmra.mrb[10].mxu0 %vm109_vm0, %v1092_v20  ;;  %1726 = vmatmul.mubr.msk.f32.vlgmr.msra.gmra.mrb[10].mxu1 %vm109_vm0, %v1092_v20  ;;  %v1488_v20 = vld [vmem:[#allocation2 + $0x7] ss:$8 sm:$0xf] }
 0x571   :  { %1836 = vmatpush1.bf16.msra.mxu0 %v2009_v10  ;;  %1844 = vmatpush1.bf16.msra.mxu1 %v2012_v14 }
 0x572   :  { %1838 = vmatprep.subr.bf16.mxu0 %v2016_v18  ;;  %1846 = vmatprep.subr.bf16.mxu1 %v2018_v19 }
 0x573   :  { %1359 = vmatprep.mubr.f32.mxu0 %v1972_v0  ;;  %1430 = vmatprep.mubr.f32.mxu1 %v1972_v0 }
 0x575   :  { %1840 = vmatpush1.bf16.msra.mxu0 %v2021_v23  ;;  %1848 = vmatpush1.bf16.msra.mxu1 %v2028_v26 }
 0x576   :  { %1850 = vmatprep.subr.bf16.mxu0 %v2005_v5  ;;  %1858 = vmatprep.subr.bf16.mxu1 %v2007_v9 }
 0x643   :  { %v1164_v21 = vpop.f32.mrb[10].mxu0  ;;  %v1235_v22 = vpop.f32.mrb[10].mxu1 }
 0x644   :  { %v1166_v24 = vpop.f32.mrb[11].mxu0  ;;  %v1237_v25 = vpop.f32.mrb[11].mxu1 }
 0x645   :  { %v1244_v27 = vcombine.low %v1164_v21, %v1166_v24  ;;  %v1245_v28 = vcombine.low %v1235_v22, %v1237_v25 }
 0x647   :  { %v1252_v29 = vrot.slane %v1244_v27, %v2046_v55  ;;  %v1259_v30 = vrot.slane %v1245_v28, %v2046_v55 }
 0x649   :  { %v1260_v31 = vcombine.low %v1252_v29, %v1259_v30 }
 0x64b   :  { %v1267_v32 = vrot.slane %v1260_v31, %v2046_v55 }
 0x64d   :  { %v1269_v34 = vadd.f32 %v1267_v32, %v1094_v33 }
 0x64f   :  { %v1727_v35 = vmul.f32 -1.442695, %v1269_v34 }
 0x651   :  { %1903 = vpow2.f32 %v1727_v35 }
 0x65b   :  { %v1904_v5 = vpop.eup %1903 }
 0x65c   :  { %v1273_v36 = vadd.f32 1.0, %v1904_v5 }
 0x65e   :  { %1905 = vrcp.f32 %v1273_v36  ;;  %v46_v36 = vld [vmem:[#allocation3 + $0xc0] ss:$0 sm:$0xff] }
 0x668   :  { %v1906_v9 = vpop.eup %1905 }
 0x669   :  { %v1277_v37 = vrot.slane %v1906_v9, 2  ;;  %v1281_v39 = vrot.slane %v1906_v9, 1  ;;  %v1287_v44 = vrot.slane %v1906_v9, 3 }
 0x66b   :  { %v1279_v38 = vmul.f32 2.0, %v1277_v37  ;;  %v1283_v41 = vmul.f32 %v1281_v39, %v1088_v15 }
 0x66d   :  { %v1728_v40 = vadd.f32 -1.0, %v1279_v38  ;;  %v47_v38 = vld [vmem:[#allocation3 + $0xe0] ss:$0 sm:$0xff] }
 0x66f   :  { %v1284_v42 = vmul.f32 %v1906_v9, %v1728_v40 }
 0x671   :  { %v1285_v43 = vadd.f32 %v1284_v42, %v1283_v41 }
 0x673   :  { %1907 = vtanh.f32 %v1285_v43 }
 0x67d   :  { %v1908_v45 = vpop.eup %1907 }
 0x67e   :  { %v1289_v46 = vmul.f32 %v1908_v45, %v1287_v44 }
 0x680   :  { %1729 = vmatmul.mubr.msk.f32.vlgmr.msra.gmra.mrb[12].mxu0 %vm109_vm0, %v1289_v46  ;;  %1730 = vmatmul.mubr.msk.f32.vlgmr.msra.gmra.mrb[12].mxu1 %vm109_vm0, %v1289_v46 }
 0x681   :  { %1852 = vmatpush1.bf16.msra.mxu0 %v2009_v10  ;;  %1860 = vmatpush1.bf16.msra.mxu1 %v2012_v14 }
 0x682   :  { %1854 = vmatprep.subr.bf16.mxu0 %v2016_v18  ;;  %1862 = vmatprep.subr.bf16.mxu1 %v2018_v19 }
 0x683   :  { %1556 = vmatprep.mubr.f32.mxu0 %v1972_v0  ;;  %1627 = vmatprep.mubr.f32.mxu1 %v1972_v0 }
 0x685   :  { %1856 = vmatpush1.bf16.msra.mxu0 %v2021_v23  ;;  %1864 = vmatpush1.bf16.msra.mxu1 %v2028_v26 }
 0x753   :  { %v1361_v47 = vpop.f32.mrb[12].mxu0  ;;  %v1432_v48 = vpop.f32.mrb[12].mxu1 }
 0x754   :  { %v1363_v49 = vpop.f32.mrb[13].mxu0  ;;  %v1434_v50 = vpop.f32.mrb[13].mxu1 }
 0x755   :  { %v1441_v51 = vcombine.low %v1361_v47, %v1363_v49  ;;  %v1442_v10 = vcombine.low %v1432_v48, %v1434_v50 }
 0x757   :  { %v1449_v14 = vrot.slane %v1441_v51, %v2046_v55  ;;  %v1456_v18 = vrot.slane %v1442_v10, %v2046_v55 }
 0x759   :  { %v1457_v52 = vcombine.low %v1449_v14, %v1456_v18 }
 0x75b   :  { %v1464_v19 = vrot.slane %v1457_v52, %v2046_v55 }
 0x75d   :  { %v1466_v54 = vadd.f32 %v1464_v19, %v1291_v53 }
 0x75f   :  { %v1731_v0 = vmul.f32 -1.442695, %v1466_v54 }
 0x761   :  { %1909 = vpow2.f32 %v1731_v0 }
 0x76b   :  { %v1910_v23 = vpop.eup %1909 }
 0x76c   :  { %v1470_v56 = vadd.f32 1.0, %v1910_v23 }
 0x76e   :  { %1911 = vrcp.f32 %v1470_v56 }
 0x778   :  { %v1912_v26 = vpop.eup %1911 }
 0x779   :  { %v1474_v57 = vrot.slane %v1912_v26, 2  ;;  %v1478_v59 = vrot.slane %v1912_v26, 1  ;;  %v1484_v1 = vrot.slane %v1912_v26, 3 }
 0x77b   :  { %v1476_v58 = vmul.f32 2.0, %v1474_v57  ;;  %v1480_v61 = vmul.f32 %v1478_v59, %v1285_v43 }
 0x77d   :  { %v1732_v60 = vadd.f32 -1.0, %v1476_v58 }
 0x77f   :  { %v1481_v62 = vmul.f32 %v1912_v26, %v1732_v60 }
 0x781   :  { %v1482_v63 = vadd.f32 %v1481_v62, %v1480_v61 }
 0x783   :  { %1913 = vtanh.f32 %v1482_v63 }
 0x78d   :  { %v1914_v2 = vpop.eup %1913 }
 0x78e   :  { %v1486_v3 = vmul.f32 %v1914_v2, %v1484_v1 }
 0x790   :  { %1733 = vmatmul.mubr.msk.f32.vlgmr.msra.gmra.mrb[14].mxu0 %vm109_vm0, %v1486_v3  ;;  %1734 = vmatmul.mubr.msk.f32.vlgmr.msra.gmra.mrb[14].mxu1 %vm109_vm0, %v1486_v3 }
 0x863   :  { %v1558_v4 = vpop.f32.mrb[14].mxu0  ;;  %v1629_v6 = vpop.f32.mrb[14].mxu1 }
 0x864   :  { %v1560_v7 = vpop.f32.mrb[15].mxu0  ;;  %v1631_v8 = vpop.f32.mrb[15].mxu1 }
 0x865   :  { %v1638_v11 = vcombine.low %v1558_v4, %v1560_v7  ;;  %v1639_v12 = vcombine.low %v1629_v6, %v1631_v8 }
 0x867   :  { %v1646_v13 = vrot.slane %v1638_v11, %v2046_v55  ;;  %v1653_v15 = vrot.slane %v1639_v12, %v2046_v55 }
 0x869   :  { %v1654_v16 = vcombine.low %v1646_v13, %v1653_v15 }
 0x86b   :  { %v1661_v17 = vrot.slane %v1654_v16, %v2046_v55 }
 0x86d   :  { %v1663_v21 = vadd.f32 %v1661_v17, %v1488_v20 }
 0x86f   :  { %v1735_v22 = vmul.f32 -1.442695, %v1663_v21 }
 0x871   :  { %1915 = vpow2.f32 %v1735_v22 }
 0x87b   :  { %v1916_v24 = vpop.eup %1915 }
 0x87c   :  { %v1667_v25 = vadd.f32 1.0, %v1916_v24 }
 0x87e   :  { %1917 = vrcp.f32 %v1667_v25 }
 0x888   :  { %v1918_v27 = vpop.eup %1917 }
 0x889   :  { %v1671_v28 = vrot.slane %v1918_v27, 2  ;;  %v1675_v30 = vrot.slane %v1918_v27, 1  ;;  %v1681_v35 = vrot.slane %v1918_v27, 3 }
 0x88b   :  { %v1673_v29 = vmul.f32 2.0, %v1671_v28  ;;  %v1677_v32 = vmul.f32 %v1675_v30, %v1482_v63 }
 0x88d   :  { %v1736_v31 = vadd.f32 -1.0, %v1673_v29 }
 0x88f   :  { %v1678_v33 = vmul.f32 %v1918_v27, %v1736_v31 }
 0x891   :  { %v1679_v34 = vadd.f32 %v1678_v33, %v1677_v32 }
 0x893   :  { %1919 = vtanh.f32 %v1679_v34 }
 0x89d   :  { %v1920_v5 = vpop.eup %1919 }
 0x89e   :  { %v1683_v55 = vmul.f32 %v1920_v5, %v1681_v35 }
 0x8a0   :  { %v1684_v9 = vmul.f32 %v1683_v55, %v46_v36 }
 0x8a2   :  { %v1686_v37 = vsel %vm1685_vm1, %v1684_v9, 0.0 }
 0x8a3   :  { %1687 = vadd.xlane.f32.xlu0 %v1686_v37 }
 0x930   :  { %v1688_v39 = vpop.xlane.xlu0 %1687 }
 0x931   :  { %v1689_v40 = vadd.f32 %v1688_v39, %v47_v38 }
 0x933   :  { %1691 = vst.msk [vmem:[#allocation6] sm:$0x1] %vm1690_vm2, %v1689_v40 }
 0x934   :  { %1954 = shalt.err (!%p1951_p12)
}
 0x935   :  { %s1955_s29 = scalar_lea.hbm %s2158_s2, 16 }
 0x936   :  { %p1956_p13 = scmp.ne.s32.totalorder %s2158_s2, %s1955_s29  ;;  %p1959_p0 = scmp.lt.u32.totalorder %s1955_s29, %s2158_s2 }
 0x938   :  { %p1961_p1 = pnand %p1959_p0, %p1956_p13 }
 0x93a   :  { %1964 = shalt.err (!%p1961_p1)
}
 0x93b   :  { %1701 = dma.vmem_to_hbm [thread:$0]  %s1699_s24, 16, %s2158_s2, [#allocation5]  }
 0x93c   :  { %1967 = dma.done.wait [#allocation5], 16  }
 0x93d   :  { %1968 = vsyncadd [#allocation5], 4294967280 }
 0x93e   :  { %1705 = vsyncpa [#allocation4], 1 }
 0x93f   :  { %1706 = vsyncpa [#allocation5], 1 }

</bundles_post_ra>
